<compile_context>
chip_gen: v5e
topology: v5e:2x2
jax: 0.10.0
libtpu: 0.0.40
codegen_flags: <defaults>
</compile_context>

<pallas_src>
import functools
import numpy as np
import jax
import jax.numpy as jnp
from jax.experimental import pallas as pl
from jax.experimental.pallas import tpu as pltpu


def _confidence_penalty_partials_kernel(*refs, n_total, has_weight):
    if has_weight:
        x_ref, t_ref, w_ref, out_ref = refs
    else:
        x_ref, t_ref, out_ref = refs
        w_ref = None

    i = pl.program_id(0)
    tile_n = x_ref.shape[0]

    x = x_ref[...].astype(jnp.float32)            # (TILE_N, C) logits (cast in-kernel)
    t = t_ref[...]                                # (TILE_N, 1) int32 targets
    c = x.shape[-1]

    ones_c = jnp.ones((c, 1), jnp.float32)

    def rowsum(v):
        # Lane-axis reduction on the otherwise-idle MXU (keeps the 2 XLUs free).
        # HIGHEST precision so the f32 multi-pass matmul stays within ~1e-6 of an XLU sum.
        return jnp.dot(v, ones_c, precision=jax.lax.Precision.HIGHEST,
                       preferred_element_type=jnp.float32)

    # numerically stable softmax pieces along the class (lane) axis
    m = jnp.max(x, axis=-1, keepdims=True)        # XLU (no MXU max)
    shifted = x - m
    e = jnp.exp(shifted)                          # EUP
    sum_exp = rowsum(e)                           # (TILE_N, 1)
    lse = jnp.log(sum_exp)
    inv_sum = pl.reciprocal(sum_exp, approx=False)          # (TILE_N, 1) only

    # entropy per row without materializing p = e / sum_exp over (TILE_N, C):
    #   ent_i = lse - sum(p * shifted) = lse - rowsum(e * shifted) / sum_exp
    ent_i = lse - rowsum(e * shifted) * inv_sum             # (TILE_N, 1)

    # select shifted[target] without a float one-hot or a gather
    col = jax.lax.broadcasted_iota(jnp.int32, x.shape, 1)   # (TILE_N, C)
    is_t = col == t                                          # (TILE_N, C) bool
    sel = rowsum(jnp.where(is_t, shifted, 0.0))
    ce_i = lse - sel                                         # (TILE_N, 1) = -logp[target]

    # mask rows past the end of the batch (tail tile padding); keep the NaN-safe select
    # (do NOT switch to multiply-by-mask: padded rows may hold inf/NaN garbage).
    row = jax.lax.broadcasted_iota(jnp.int32, (tile_n, 1), 0)
    valid = (row + i * tile_n) < n_total                     # (TILE_N, 1) bool

    if has_weight:
        w_i = rowsum(jnp.where(is_t, w_ref[...], 0.0))       # class weight of each target
        wce_sum = jnp.sum(jnp.where(valid, w_i * ce_i, 0.0))
        w_sum = jnp.sum(jnp.where(valid, w_i, 0.0))
    else:
        wce_sum = jnp.sum(jnp.where(valid, ce_i, 0.0))
        # number of valid rows as a scalar — no iota/where/reduce needed
        w_sum = jnp.minimum(jnp.int32(tile_n),
                            jnp.int32(n_total) - i * tile_n).astype(jnp.float32)
    ent_sum = jnp.sum(jnp.where(valid, ent_i, 0.0))

    # lane-dense per-tile partials: sublane 0 = sum(w*ce), 1 = sum(w), 2 = sum(ent)
    row8 = jax.lax.broadcasted_iota(jnp.int32, (8, 128), 0)
    out_ref[0] = jnp.where(
        row8 == 0, wce_sum,
        jnp.where(row8 == 1, w_sum,
                  jnp.where(row8 == 2, ent_sum, jnp.float32(0.0))))


def _round_up(x, m):
    return ((x + m - 1) // m) * m


def _tpu_vmem_capacity_bytes():
    """Best-effort physical VMEM-per-core query; conservative (v7x-sized) fallback."""
    try:
        info = pltpu.get_tpu_info()
        cap = getattr(info, "vmem_capacity_bytes", None)
        if cap:
            return int(cap)
    except Exception:
        pass
    try:
        kind = jax.devices()[0].device_kind.lower()
    except Exception:
        kind = ""
    if ("v5" in kind) or ("v6" in kind):
        return 128 * 1024 * 1024
    return 64 * 1024 * 1024            # v7x-class / unknown -> be conservative


def _pick_tile_n(n, c, in_itemsize, vmem_limit_bytes):
    # Per-row VMEM footprint of a tile:
    #   2x double-buffered native-dtype logits (BlockSpec pipelining)
    # + ~5 live (TILE_N, C) f32-equivalent temporaries (cast, shifted, e, products, iota/mask)
    per_row = c * (2 * in_itemsize + 5 * 4)
    budget = int(0.6 * vmem_limit_bytes)
    rows = max(8, budget // per_row)
    tile_n = min(int(rows), _round_up(n, 8))
    return max(8, (tile_n // 8) * 8)


def confidence_penalty_loss(outputs, targets, weight=None, penalty_weight=0.1,
                            reduction="mean", tile_n=None):
    """outputs: (N, C) logits (any float dtype); targets: (N,) int class indices."""
    if reduction not in ("mean", "sum"):
        # TODO(synk): reduction='none' returns per-sample vectors; not implemented here.
        raise NotImplementedError("only 'mean' and 'sum' reductions are implemented")

    N, C = outputs.shape
    t2d = targets.reshape(N, 1).astype(jnp.int32)
    has_weight = weight is not None

    # Generation-aware scoped-VMEM limit: <=48 MiB on 64 MiB-VMEM chips (v7x),
    # 64 MiB on 128 MiB-VMEM chips (v5e/v6e).
    vmem_cap = _tpu_vmem_capacity_bytes()
    vmem_limit = 48 * 1024 * 1024 if vmem_cap < 128 * 1024 * 1024 else 64 * 1024 * 1024

    if tile_n is None:
        tile_n = _pick_tile_n(N, C, int(np.dtype(outputs.dtype).itemsize), vmem_limit)
    num_tiles = pl.cdiv(N, tile_n)

    in_specs = [
        pl.BlockSpec((tile_n, C), lambda i: (i, 0)),   # logits tile (native dtype in HBM)
        pl.BlockSpec((tile_n, 1), lambda i: (i, 0)),   # targets tile
    ]
    args = [outputs, t2d]
    if has_weight:
        w2d = jnp.asarray(weight, dtype=jnp.float32).reshape(1, C)
        # constant index_map -> class weights stay resident in VMEM (no re-DMA per tile)
        in_specs.append(pl.BlockSpec((1, C), lambda i: (0, 0)))
        args.append(w2d)

    kernel = functools.partial(
        _confidence_penalty_partials_kernel,
        n_total=N,
        has_weight=has_weight,
    )

    partials = pl.pallas_call(
        kernel,
        out_shape=jax.ShapeDtypeStruct((num_tiles, 8, 128), jnp.float32),
        grid_spec=pltpu.PrefetchScalarGridSpec(
            num_scalar_prefetch=0,
            grid=(num_tiles,),
            in_specs=in_specs,
            out_specs=pl.BlockSpec((1, 8, 128), lambda i: (i, 0, 0)),
        ),
        compiler_params=pltpu.CompilerParams(
            # "parallel" lets the 1-D grid shard across both v7x TensorCores; no
            # loop-carried accumulator, so tiles are fully independent.
            dimension_semantics=("parallel",),
            vmem_limit_bytes=vmem_limit,
        ),
    )(*args)

    # tiny final reduce + combine in plain JAX
    red = jnp.sum(partials, axis=0)            # (8, 128)
    wce_sum = red[0, 0]
    w_sum = red[1, 0]
    ent_sum = red[2, 0]

    if reduction == "mean":
        ce = wce_sum / w_sum                   # PyTorch weighted-mean CE
        ent = ent_sum / jnp.float32(N)
    else:  # "sum"
        ce = wce_sum
        ent = ent_sum
    return ce - jnp.float32(penalty_weight) * ent


def _reference_loss(outputs, targets, weight=None, penalty_weight=0.1, reduction="mean"):
    # pure-JAX reference mirroring PyTorch semantics
    x = outputs.astype(jnp.float32)
    logp = jax.nn.log_softmax(x, axis=1)
    p = jnp.exp(logp)
    n, c = x.shape
    onehot = jax.nn.one_hot(targets, c, dtype=jnp.float32)
    ce_i = -jnp.sum(onehot * logp, axis=1)
    if weight is None:
        w_i = jnp.ones((n,), jnp.float32)
    else:
        w_i = jnp.asarray(weight, jnp.float32)[targets]
    ent_i = -jnp.sum(p * logp, axis=1)
    if reduction == "mean":
        ce = jnp.sum(w_i * ce_i) / jnp.sum(w_i)
        ent = jnp.mean(ent_i)
    else:
        ce = jnp.sum(w_i * ce_i)
        ent = jnp.sum(ent_i)
    return ce - penalty_weight * ent


if __name__ == "__main__":
    key = jax.random.PRNGKey(0)
    k1, k2, k3, k4, k5, k6, k7 = jax.random.split(key, 7)

    # Case 1: unweighted, mean reduction, single tile (batch=8, classes=32).
    N1, C1 = 8, 32
    logits1 = jax.random.normal(k1, (N1, C1), dtype=jnp.float32)
    targets1 = jax.random.randint(k2, (N1,), 0, C1, dtype=jnp.int32)
    loss1 = jax.block_until_ready(
        confidence_penalty_loss(logits1, targets1, penalty_weight=0.1))
    ref1 = jax.block_until_ready(_reference_loss(logits1, targets1, None, 0.1))
    assert np.allclose(np.asarray(loss1), np.asarray(ref1), rtol=1e-4, atol=1e-5), \
        f"case1 mismatch: kernel={loss1} ref={ref1}"

    # Case 2: class-weighted, multi-tile grid with a masked tail (batch=20, classes=48).
    N2, C2 = 20, 48
    logits2 = jax.random.normal(k3, (N2, C2), dtype=jnp.float32)
    targets2 = jax.random.randint(k4, (N2,), 0, C2, dtype=jnp.int32)
    cls_w = jax.random.uniform(k5, (C2,), dtype=jnp.float32, minval=0.5, maxval=2.0)
    loss2 = jax.block_until_ready(
        confidence_penalty_loss(logits2, targets2, weight=cls_w,
                                penalty_weight=0.1, tile_n=8))
    ref2 = jax.block_until_ready(_reference_loss(logits2, targets2, cls_w, 0.1))
    assert np.allclose(np.asarray(loss2), np.asarray(ref2), rtol=1e-4, atol=1e-5), \
        f"case2 mismatch: kernel={loss2} ref={ref2}"

    # Case 3: bf16 logits stay native in HBM (cast in-kernel), sum reduction.
    N3, C3 = 16, 32
    logits3 = jax.random.normal(k6, (N3, C3), dtype=jnp.float32).astype(jnp.bfloat16)
    targets3 = jax.random.randint(k7, (N3,), 0, C3, dtype=jnp.int32)
    loss3 = jax.block_until_ready(
        confidence_penalty_loss(logits3, targets3, penalty_weight=0.25, reduction="sum"))
    ref3 = jax.block_until_ready(
        _reference_loss(logits3, targets3, None, 0.25, reduction="sum"))
    assert np.allclose(np.asarray(loss3), np.asarray(ref3), rtol=1e-4, atol=1e-4), \
        f"case3 mismatch: kernel={loss3} ref={ref3}"

    print("KERNEL_OK")
</pallas_src>

<mosaic_0001>
module attributes {stable_mosaic.version = 11 : i64} {
  func.func @_confidence_penalty_partials_kernel(%arg0: i32, %arg1: memref<8x32xf32, #tpu.memory_space<vmem>>, %arg2: memref<8x1xi32, #tpu.memory_space<vmem>>, %arg3: memref<1x8x128xf32, #tpu.memory_space<vmem>>) attributes {dimension_semantics = [#tpu.dimension_semantics<parallel>], iteration_bounds = array<i64: 1>, scalar_prefetch = 0 : i64, scratch_operands = 0 : i64, tpu.core_type = #tpu.core_type<tc>, window_params = [{transform_indices = @transform_0, window_bounds = array<i64: 8, 32>}, {transform_indices = @transform_1, window_bounds = array<i64: 8, 1>}, {transform_indices = @transform_2, window_bounds = array<i64: 1, 8, 128>}]} {
    %c0 = arith.constant 0 : index
    %c0_0 = arith.constant 0 : index
    %0 = vector.load %arg1[%c0, %c0_0] : memref<8x32xf32, #tpu.memory_space<vmem>>, vector<8x32xf32>
    %c0_1 = arith.constant 0 : index
    %c0_2 = arith.constant 0 : index
    %1 = vector.load %arg2[%c0_1, %c0_2] : memref<8x1xi32, #tpu.memory_space<vmem>>, vector<8x1xi32>
    %cst = arith.constant 1.000000e+00 : f32
    %2 = vector.broadcast %cst : f32 to vector<32x1xf32>
    %cst_3 = arith.constant dense<0xFF800000> : vector<8xf32>
    %3 = vector.multi_reduction <maximumf>, %0, %cst_3 [1] : vector<8x32xf32> to vector<8xf32>
    %4 = vector.shape_cast %3 : vector<8xf32> to vector<8x1xf32>
    %5 = vector.broadcast %4 : vector<8x1xf32> to vector<8x32xf32>
    %6 = arith.subf %0, %5 : vector<8x32xf32>
    %7 = math.exp %6 : vector<8x32xf32>
    %cst_4 = arith.constant dense<0.000000e+00> : vector<8x1xf32>
    %8 = tpu.matmul %7, %2, %cst_4 {dimension_numbers = #tpu.dot_dimension_numbers<[1], [0], [0], [1], [0, 0, 1, 1], [], []>, precision = #tpu.contract_precision<fp32>} : vector<8x32xf32>, vector<32x1xf32>, vector<8x1xf32> -> vector<8x1xf32>
    %9 = math.log %8 : vector<8x1xf32>
    %10 = tpu.reciprocal %8 : vector<8x1xf32> -> vector<8x1xf32>
    %11 = arith.mulf %7, %6 : vector<8x32xf32>
    %cst_5 = arith.constant dense<0.000000e+00> : vector<8x1xf32>
    %12 = tpu.matmul %11, %2, %cst_5 {dimension_numbers = #tpu.dot_dimension_numbers<[1], [0], [0], [1], [0, 0, 1, 1], [], []>, precision = #tpu.contract_precision<fp32>} : vector<8x32xf32>, vector<32x1xf32>, vector<8x1xf32> -> vector<8x1xf32>
    %13 = arith.mulf %12, %10 : vector<8x1xf32>
    %14 = arith.subf %9, %13 : vector<8x1xf32>
    %15 = tpu.iota {dimensions = array<i32: 1>} : vector<8x32xi32>
    %16 = vector.broadcast %1 : vector<8x1xi32> to vector<8x32xi32>
    %17 = arith.cmpi eq, %15, %16 : vector<8x32xi32>
    %cst_6 = arith.constant 0.000000e+00 : f32
    %18 = vector.broadcast %cst_6 : f32 to vector<8x32xf32>
    %19 = arith.select %17, %6, %18 : vector<8x32xi1>, vector<8x32xf32>
    %cst_7 = arith.constant dense<0.000000e+00> : vector<8x1xf32>
    %20 = tpu.matmul %19, %2, %cst_7 {dimension_numbers = #tpu.dot_dimension_numbers<[1], [0], [0], [1], [0, 0, 1, 1], [], []>, precision = #tpu.contract_precision<fp32>} : vector<8x32xf32>, vector<32x1xf32>, vector<8x1xf32> -> vector<8x1xf32>
    %21 = arith.subf %9, %20 : vector<8x1xf32>
    %22 = tpu.iota {dimensions = array<i32: 0>} : vector<8x1xi32>
    %c8_i32 = arith.constant 8 : i32
    %23 = arith.muli %arg0, %c8_i32 : i32
    %24 = vector.broadcast %23 : i32 to vector<8x1xi32>
    %25 = arith.addi %22, %24 : vector<8x1xi32>
    %c8_i32_8 = arith.constant 8 : i32
    %26 = vector.broadcast %c8_i32_8 : i32 to vector<8x1xi32>
    %27 = arith.cmpi slt, %25, %26 : vector<8x1xi32>
    %cst_9 = arith.constant 0.000000e+00 : f32
    %28 = vector.broadcast %cst_9 : f32 to vector<8x1xf32>
    %29 = arith.select %27, %21, %28 : vector<8x1xi1>, vector<8x1xf32>
    %30 = vector.shape_cast %29 : vector<8x1xf32> to vector<1x8x1xf32>
    %cst_10 = arith.constant dense<0.000000e+00> : vector<1xf32>
    %31 = vector.multi_reduction <add>, %30, %cst_10 [1, 2] : vector<1x8x1xf32> to vector<1xf32>
    %32 = vector.shape_cast %31 : vector<1xf32> to vector<1x1x1xf32>
    %33 = vector.extract %32[0, 0, 0] : f32 from vector<1x1x1xf32>
    %c8_i32_11 = arith.constant 8 : i32
    %34 = arith.muli %arg0, %c8_i32_11 : i32
    %c8_i32_12 = arith.constant 8 : i32
    %35 = arith.subi %c8_i32_12, %34 : i32
    %c8_i32_13 = arith.constant 8 : i32
    %36 = arith.minsi %c8_i32_13, %35 : i32
    %37 = arith.sitofp %36 : i32 to f32
    %cst_14 = arith.constant 0.000000e+00 : f32
    %38 = vector.broadcast %cst_14 : f32 to vector<8x1xf32>
    %39 = arith.select %27, %14, %38 : vector<8x1xi1>, vector<8x1xf32>
    %40 = vector.shape_cast %39 : vector<8x1xf32> to vector<1x8x1xf32>
    %cst_15 = arith.constant dense<0.000000e+00> : vector<1xf32>
    %41 = vector.multi_reduction <add>, %40, %cst_15 [1, 2] : vector<1x8x1xf32> to vector<1xf32>
    %42 = vector.shape_cast %41 : vector<1xf32> to vector<1x1x1xf32>
    %43 = vector.extract %42[0, 0, 0] : f32 from vector<1x1x1xf32>
    %44 = tpu.iota {dimensions = array<i32: 0>} : vector<8x128xi32>
    %c0_i32 = arith.constant 0 : i32
    %45 = vector.broadcast %c0_i32 : i32 to vector<8x128xi32>
    %46 = arith.cmpi eq, %44, %45 : vector<8x128xi32>
    %c1_i32 = arith.constant 1 : i32
    %47 = vector.broadcast %c1_i32 : i32 to vector<8x128xi32>
    %48 = arith.cmpi eq, %44, %47 : vector<8x128xi32>
    %c2_i32 = arith.constant 2 : i32
    %49 = vector.broadcast %c2_i32 : i32 to vector<8x128xi32>
    %50 = arith.cmpi eq, %44, %49 : vector<8x128xi32>
    %cst_16 = arith.constant 0.000000e+00 : f32
    %51 = vector.broadcast %43 : f32 to vector<8x128xf32>
    %52 = vector.broadcast %cst_16 : f32 to vector<8x128xf32>
    %53 = arith.select %50, %51, %52 : vector<8x128xi1>, vector<8x128xf32>
    %54 = vector.broadcast %37 : f32 to vector<8x128xf32>
    %55 = arith.select %48, %54, %53 : vector<8x128xi1>, vector<8x128xf32>
    %56 = vector.broadcast %33 : f32 to vector<8x128xf32>
    %57 = arith.select %46, %56, %55 : vector<8x128xi1>, vector<8x128xf32>
    %c0_17 = arith.constant 0 : index
    %c0_18 = arith.constant 0 : index
    %c0_19 = arith.constant 0 : index
    %58 = vector.load %arg3[%c0_17, %c0_18, %c0_19] : memref<1x8x128xf32, #tpu.memory_space<vmem>>, vector<1x8x128xf32>
    %59 = vector.shape_cast %58 : vector<1x8x128xf32> to vector<8x128xf32>
    %60 = vector.shape_cast %57 : vector<8x128xf32> to vector<1x8x128xf32>
    tpu.vector_store %arg3[%c0_17, %c0_18, %c0_19], %60 {strides = array<i32>} : memref<1x8x128xf32, #tpu.memory_space<vmem>>, vector<1x8x128xf32>,
    return
  }
  func.func @transform_0(%arg0: i32) -> (i32, i32) {
    %c0_i32 = arith.constant 0 : i32
    %c0_i32_0 = arith.constant 0 : i32
    return %arg0, %c0_i32 : i32, i32
  }
  func.func @transform_1(%arg0: i32) -> (i32, i32) {
    %c0_i32 = arith.constant 0 : i32
    %c0_i32_0 = arith.constant 0 : i32
    return %arg0, %c0_i32 : i32, i32
  }
  func.func @transform_2(%arg0: i32) -> (i32, i32, i32) {
    %c0_i32 = arith.constant 0 : i32
    %c0_i32_0 = arith.constant 0 : i32
    %c0_i32_1 = arith.constant 0 : i32
    return %arg0, %c0_i32, %c0_i32_0 : i32, i32, i32
  }
}

</mosaic_0001>

<bundles_post_ra>
// kernel: tpu_custom_call.1
= control target key start
LH: loop header
LB: loop body
LE: loop exit
PB: predicated region body
PF: predicated region fallthrough
CT: control target
= control target key end

     0   :  { %vm14_vm0 = vcmask 261120   ;;  %s635_s0 = inlined_call_operand.vmem [shape: f32[8,32], index: 0, kind: input, shape index: {}]   ;;  %s636_s1 = inlined_call_operand.vmem [shape: s32[8,1], index: 1, kind: input, shape index: {}]   ;;  %s637_s2 = inlined_call_operand.hbm [shape: f32[1,8,128], index: 2, kind: output, shape index: {}]  }
   0x1   :  { %v12_v0 = vld [vmem:[%s635_s0] sm:$0xff] }
   0x2   :  { %7 = vsyncpa [#allocation3], 0  ;;  %v15_v1 = vsel %vm14_vm0, %v12_v0, -inf  ;;  %v556_v2 = vmov 0   ;;  %v13_v3 = vld [vmem:[%s636_s1] sm:$0xff]  ;;  %v557_v4 = vmov 1.0   ;;  %v312_v12 = vlaneseq }
   0x3   :  { %523 = vset.pattern.permute.xlu0 %v556_v2  ;;  %104 = vmatpush.msra.mxu3 %v557_v4  ;;  %v558_v5 = vmov 0.0   ;;  %vm463_vm6 = vcmask 7168   ;;  %s559_s1 = smov [#allocation2]   ;;  %s506_s17 = sshll.u32 %s637_s2, 4  ;;  %s507_s17 = int_to_ptr.hbm [resolvable:$true] %s506_s17 }
   0x4   :  { %16 = vmax.xlane.f32.xlu0 %v15_v1  ;;  %36 = vmatpush.msra.mxu0 %v557_v4  ;;  %v313_v17 = vand.u32 127, %v312_v12  ;;  %s504_s13 = sshll.u32 %s559_s1, 4  ;;  %s505_s13 = int_to_ptr.vmem [resolvable:$true] %s504_s13 }
   0x5   :  { %64 = vmatpush.msra.mxu1 %v558_v5  ;;  %105 = vmatpush.msra.mxu3 %v557_v4 }
   0x6   :  { %85 = vmatpush.msra.mxu2 %v558_v5  ;;  %37 = vmatpush.msra.mxu0 %v557_v4 }
   0x7   :  { %106 = vmatpush.msra.mxu3 %v557_v4  ;;  %130 = vmatpush.msrb.mxu1 %v558_v5 }
   0x8   :  { %148 = vmatpush.msrb.mxu2 %v557_v4  ;;  %38 = vmatpush.msra.mxu0 %v557_v4 }
   0x9   :  { %107 = vmatpush.msra.mxu3 %v557_v4 }
   0xa   :  { %149 = vmatpush.msrb.mxu2 %v557_v4  ;;  %39 = vmatpush.msra.mxu0 %v557_v4 }
   0xb   :  { %217 = vmatpush.msrb.mxu3 %v558_v5 }
   0xc   :  { %150 = vmatpush.msrb.mxu2 %v557_v4  ;;  %189 = vmatpush.msrb.mxu0 %v557_v4 }
   0xe   :  { %151 = vmatpush.msrb.mxu2 %v557_v4  ;;  %190 = vmatpush.msrb.mxu0 %v557_v4 }
  0x10   :  { %191 = vmatpush.msrb.mxu0 %v557_v4 }
  0x12   :  { %192 = vmatpush.msrb.mxu0 %v557_v4 }
  0x18   :  { %315 = vperm.xlu0 %523, %v13_v3  }
  0x77   :  { %v17_v6 = vpop.xlane.xlu0 %16 }
  0x78   :  { %v18_v7 = vsub.f32 %v12_v0, %v17_v6 }
  0x7a   :  { %v19_v8 = vmul.f32 1.442695, %v18_v7 }
  0x7c   :  { %524 = vpow2.f32 %v19_v8 }
  0x82   :  { %v525_v9 = vpop.eup %524 }
  0x83   :  { %v173_v10 = vmul.f32 %v525_v9, %v18_v7  ;;  %v22_v11 = vsel %vm14_vm0, %v525_v9, 0 }
  0x84   :  { %v40_v13 = vand.u32 4294901760, %v22_v11 }
  0x85   :  { %v175_v14 = vsel %vm14_vm0, %v173_v10, 0 }
  0x86   :  { %66 = vmatmul.f32.vlgmr.msra.gmra.mxu1 %v40_v13  ;;  %v41_v15 = vsub.f32 %v22_v11, %v40_v13  ;;  %v193_v16 = vand.u32 4294901760, %v175_v14 }
  0x87   :  { %238 = vmatpush.msra.mxu1 %v558_v5 }
  0x88   :  { %88 = vmatmul.f32.vlgmr.msra.gmra.mxu2 %v41_v15  ;;  %v42_v18 = vand.u32 4294901760, %v41_v15  ;;  %v194_v19 = vsub.f32 %v175_v14, %v193_v16 }
  0x89   :  { %257 = vmatpush.msra.mxu2 %v557_v4 }
  0x8a   :  { %111 = vmatmul.f32.vlgmr.msra.gmra.mxu3 %v42_v18  ;;  %v316_v20 = vpop.permute.xlu0 %315  ;;  %v43_v21 = vsub.f32 %v41_v15, %v42_v18  ;;  %v195_v24 = vand.u32 4294901760, %v194_v19 }
  0x8b   :  { %vm317_vm1 = vcmp.eq.s32.totalorder %v313_v17, %v316_v20  ;;  %258 = vmatpush.msra.mxu2 %v557_v4  ;;  %301 = vmatpush.msra.mxu3 %v557_v4 }
  0x8c   :  { %v318_v22 = vsel %vm317_vm1, %v18_v7, 0.0  ;;  %v44_v23 = vand.u32 4294901760, %v43_v21  ;;  %v196_v28 = vsub.f32 %v194_v19, %v195_v24 }
  0x8d   :  { %v320_v25 = vsel %vm14_vm0, %v318_v22, 0  ;;  %259 = vmatpush.msra.mxu2 %v557_v4  ;;  %302 = vmatpush.msra.mxu3 %v557_v4 }
  0x8e   :  { %v338_v26 = vand.u32 4294901760, %v320_v25  ;;  %45 = vmatmul.f32.vlgmr.msra.gmra.mxu0 %v44_v23  ;;  %132 = vmatmul.f32.vlgmr.msrb.gmra.mxu1 %v40_v13  ;;  %v197_v30 = vand.u32 4294901760, %v196_v28 }
  0x8f   :  { %260 = vmatpush.msra.mxu2 %v557_v4  ;;  %303 = vmatpush.msra.mxu3 %v557_v4 }
  0x90   :  { %v339_v27 = vsub.f32 %v320_v25, %v338_v26  ;;  %153 = vmatmul.f32.vlgmr.msrb.gmra.mxu2 %v40_v13  ;;  %334 = vmatpush.msrb.mxu1 %v557_v4 }
  0x91   :  { %283 = vmatpush.msra.mxu0 %v558_v5  ;;  %362 = vmatpush.msrb.mxu2 %v558_v5 }
  0x92   :  { %219 = vmatmul.f32.vlgmr.msrb.gmra.mxu3 %v193_v16  ;;  %335 = vmatpush.msrb.mxu1 %v557_v4  ;;  %v340_v29 = vand.u32 4294901760, %v339_v27 }
  0x93   :  { %304 = vmatpush.msra.mxu3 %v557_v4 }
  0x94   :  { %336 = vmatpush.msrb.mxu1 %v557_v4  ;;  %v341_v31 = vsub.f32 %v339_v27, %v340_v29 }
  0x95   :  { %402 = vmatpush.msrb.mxu3 %v557_v4 }
  0x96   :  { %198 = vmatmul.f32.vlgmr.msrb.gmra.mxu0 %v197_v30  ;;  %241 = vmatmul.f32.vlgmr.msra.gmra.mxu1 %v194_v19  ;;  %v342_v32 = vand.u32 4294901760, %v341_v31 }
  0x97   :  { %337 = vmatpush.msrb.mxu1 %v557_v4  ;;  %403 = vmatpush.msrb.mxu3 %v557_v4 }
  0x98   :  { %264 = vmatmul.f32.vlgmr.msra.gmra.mxu2 %v195_v24  ;;  %383 = vmatpush.msrb.mxu0 %v558_v5 }
  0x99   :  { %404 = vmatpush.msrb.mxu3 %v557_v4  ;;  %446 = vmatpush.msra.mxu2 %v557_v4 }
  0x9a   :  { %306 = vmatmul.f32.vlgmr.msra.gmra.mxu3 %v193_v16  ;;  %428 = vmatpush.msra.mxu1 %v558_v5 }
  0x9b   :  { %405 = vmatpush.msrb.mxu3 %v557_v4  ;;  %447 = vmatpush.msra.mxu2 %v557_v4 }
  0x9d   :  { %448 = vmatpush.msra.mxu2 %v557_v4 }
  0x9e   :  { %285 = vmatmul.f32.vlgmr.msra.gmra.mxu0 %v193_v16  ;;  %343 = vmatmul.f32.vlgmr.msrb.gmra.mxu1 %v342_v32 }
  0x9f   :  { %449 = vmatpush.msra.mxu2 %v557_v4 }
  0xa0   :  { %364 = vmatmul.f32.vlgmr.msrb.gmra.mxu2 %v338_v26 }
  0xa2   :  { %409 = vmatmul.f32.vlgmr.msrb.gmra.mxu3 %v340_v29 }
  0xa6   :  { %386 = vmatmul.f32.vlgmr.msrb.gmra.mxu0 %v339_v27  ;;  %430 = vmatmul.f32.vlgmr.msra.gmra.mxu1 %v338_v26 }
  0xa8   :  { %451 = vmatmul.f32.vlgmr.msra.gmra.mxu2 %v338_v26 }
 0x103   :  { %v67_v33 = vpop.f32.mrf.mxu1 }
 0x10b   :  { %v46_v34 = vpop.f32.mrf.mxu0  ;;  %v89_v35 = vpop.f32.mrf.mxu2 }
 0x10c   :  { %v68_v36 = vadd.f32 %v67_v33, %v46_v34  ;;  %v133_v37 = vpop.f32.mrf.mxu1  ;;  %v457_v34 = vshrl.u32 %v312_v12, 7 }
 0x10d   :  { %v112_v38 = vpop.f32.mrf.mxu3 }
 0x10e   :  { %v90_v39 = vadd.f32 %v89_v35, %v68_v36  ;;  %vm491_vm7 = vcmp.eq.s32.totalorder %v457_v34, 2  ;;  %vm490_vm8 = vcmp.eq.s32.totalorder %v457_v34, 1  ;;  %vm489_vm9 = vcmp.eq.s32.totalorder %v457_v34, 0 }
 0x110   :  { %v113_v40 = vadd.f32 %v112_v38, %v90_v39 }
 0x112   :  { %v134_v41 = vadd.f32 %v133_v37, %v113_v40 }
 0x113   :  { %v154_v42 = vpop.f32.mrf.mxu2  ;;  %v199_v43 = vpop.f32.mrf.mxu0 }
 0x114   :  { %v155_v44 = vadd.f32 %v154_v42, %v134_v41  ;;  %v242_v45 = vpop.f32.mrf.mxu1 }
 0x115   :  { %v220_v46 = vpop.f32.mrf.mxu3 }
 0x116   :  { %526 = vrcp.f32 %v155_v44  ;;  %v221_v54 = vadd.f32 %v220_v46, %v199_v43  ;;  %v170_v63 = vand.u32 2147483648, %v155_v44  ;;  %vm164_vm3 = vweird.f32 %v155_v44 }
 0x117   :  { %528 = vlog2.f32 %v155_v44  ;;  %v168_v1 = vand.u32 2147483647, %v155_v44 }
 0x118   :  { %v243_v57 = vadd.f32 %v242_v45, %v221_v54  ;;  %v171_v8 = vor.u32 1.1754944e-38, %v170_v63 }
 0x119   :  { %vm169_vm5 = vcmp.eq.f32.partialorder %v168_v1, 8.507059e+37 }
 0x11b   :  { %v265_v47 = vpop.f32.mrf.mxu2  ;;  %v286_v48 = vpop.f32.mrf.mxu0 }
 0x11c   :  { %v527_v49 = vpop.eup %526  ;;  %v344_v52 = vpop.f32.mrf.mxu1  ;;  %v266_v60 = vadd.f32 %v265_v47, %v243_v57 }
 0x11d   :  { %v160_v50 = vmul.f32 %v527_v49, %v155_v44  ;;  %v307_v51 = vpop.f32.mrf.mxu3  ;;  %vm165_vm2 = vweird.f32 %v527_v49  ;;  %v529_v3 = vpop.eup %528 }
 0x11e   :  { %vm166_vm4 = vmor %vm164_vm3, %vm165_vm2  ;;  %v287_v5 = vadd.f32 %v286_v48, %v266_v60  ;;  %v158_v11 = vmul.f32 0.6931472, %v529_v3 }
 0x11f   :  { %v161_v53 = vsub.f32 1.0, %v160_v50 }
 0x120   :  { %v308_v14 = vadd.f32 %v307_v51, %v287_v5 }
 0x121   :  { %v162_v55 = vmul.f32 %v527_v49, %v161_v53 }
 0x123   :  { %v365_v56 = vpop.f32.mrf.mxu2  ;;  %v387_v59 = vpop.f32.mrf.mxu0  ;;  %v163_v61 = vadd.f32 %v527_v49, %v162_v55 }
 0x124   :  { %v366_v58 = vadd.f32 %v365_v56, %v344_v52  ;;  %v431_v4 = vpop.f32.mrf.mxu1 }
 0x125   :  { %v410_v0 = vpop.f32.mrf.mxu3  ;;  %v167_v6 = vsel %vm166_vm4, %v527_v49, %v163_v61 }
 0x126   :  { %v388_v62 = vadd.f32 %v387_v59, %v366_v58  ;;  %v172_v13 = vsel %vm169_vm5, %v171_v8, %v167_v6 }
 0x127   :  { %v310_v16 = vmul.f32 %v308_v14, %v172_v13 }
 0x128   :  { %v411_v2 = vadd.f32 %v410_v0, %v388_v62 }
 0x129   :  { %v311_v18 = vsub.f32 %v158_v11, %v310_v16 }
 0x12a   :  { %v432_v7 = vadd.f32 %v431_v4, %v411_v2 }
 0x12b   :  { %v452_v9 = vpop.f32.mrf.mxu2  ;;  %v479_v19 = vsel %vm463_vm6, %v311_v18, 0.0 }
 0x12c   :  { %v453_v10 = vadd.f32 %v452_v9, %v432_v7 }
 0x12e   :  { %v455_v15 = vsub.f32 %v158_v11, %v453_v10 }
 0x130   :  { %v464_v17 = vsel %vm463_vm6, %v455_v15, 0.0 }
 0x131   :  { %465 = vadd.xlane.f32.xlu1 %v464_v17 }
 0x139   :  { %480 = vadd.xlane.f32.xlu1 %v479_v19 }
 0x1a4   :  { %v466_v20 = vpop.xlane.xlu1 %465 }
 0x1a5   :  { %v467_v21 = vrot.slane %v466_v20, 4 }
 0x1a7   :  { %v468_v22 = vadd.f32 %v467_v21, %v466_v20 }
 0x1a9   :  { %v469_v23 = vrot.slane %v468_v22, 2 }
 0x1ab   :  { %v470_v24 = vadd.f32 %v469_v23, %v468_v22 }
 0x1ac   :  { %v481_v25 = vpop.xlane.xlu1 %480 }
 0x1ad   :  { %v482_v26 = vrot.slane %v481_v25, 4  ;;  %v471_v27 = vrot.slane %v470_v24, 1 }
 0x1af   :  { %v483_v28 = vadd.f32 %v482_v26, %v481_v25  ;;  %v472_v29 = vadd.f32 %v471_v27, %v470_v24 }
 0x1b1   :  { %v484_v30 = vrot.slane %v483_v28, 2  ;;  %515 = vpush %v472_v29 }
 0x1b3   :  { %v485_v31 = vadd.f32 %v484_v30, %v483_v28 }
 0x1b5   :  { %v486_v32 = vrot.slane %v485_v31, 1 }
 0x1b7   :  { %v487_v33 = vadd.f32 %v486_v32, %v485_v31 }
 0x1b9   :  { %517 = vpush %v487_v33 }
 0x1e2   :  { %s516_s0 = spop %515 }
 0x1e3   :  { %v496_v37 = vstv %s516_s0 }
 0x1ea   :  { %s518_s14 = spop %517 }
 0x1eb   :  { %v492_v35 = vstv %s518_s14 }
 0x1ec   :  { %v493_v36 = vsel %vm491_vm7, %v492_v35, 0.0 }
 0x1ed   :  { %v495_v38 = vsel %vm490_vm8, 8.0, %v493_v36 }
 0x1ee   :  { %v497_v39 = vsel %vm489_vm9, %v496_v37, %v495_v38 }
 0x1ef   :  { %498 = vst [vmem:[#allocation2] sm:$0xff] %v497_v39 }
 0x1f0   :  { %509 = dma.vmem_to_hbm [thread:$0]  %s505_s13, 128, %s507_s17, [#allocation3]  }
 0x1f1   :  { %554 = dma.done.wait [#allocation3], 128  }
 0x1f2   :  { %555 = vsyncadd [#allocation3], 4294967168 }
 0x1f3   :  { %514 = vsyncpa [#allocation3], 1 }

</bundles_post_ra>
